<compile_context>
chip_gen: v7x
topology: tpu7x:2x2x1
jax: 0.10.0
libtpu: 0.0.40
codegen_flags: <defaults>
</compile_context>

<pallas_src>
from functools import partial

import jax
import jax.numpy as jnp
from jax.experimental import pallas as pl
from jax.experimental.pallas import tpu as pltpu


def _recon_kernel(u_ref, c_ref, p_ref, o_ref):
    # u_ref: (2*Tp, k)  rows [0:Tp) = x-eigenrows (zero-padded past T),
    #                   rows [Tp:2Tp) = y-eigenrows (zero-padded past T)
    # c_ref: (k, L)     coefficients, lane axis = flattened (sample, ped)
    # p_ref: (4, L)     row 0: cos/sca, row 1: sin/sca, row 2: ori_x, row 3: ori_y
    # o_ref: (2*Tp, L)  rows [0:Tp) = x output, rows [Tp:2Tp) = y output
    tp = o_ref.shape[0] // 2

    m = jnp.dot(u_ref[...], c_ref[...],
                preferred_element_type=jnp.float32)          # (2*Tp, L) on MXU
    x = m[:tp, :]
    y = m[tp:, :]

    a = p_ref[0:1, :]        # cos / sca
    b = p_ref[1:2, :]        # sin / sca
    ox = p_ref[2:3, :]       # origin x
    oy = p_ref[3:4, :]       # origin y

    # TrajNorm.denormalize with 1/sca pre-folded: rotate by rot^T, translate.
    o_ref[:tp, :] = x * a - y * b + ox
    o_ref[tp:, :] = x * b + y * a + oy


def prepare_u_stack(U_pred_trunc):
    """One-time parameter transform (model-load time, NOT per forward call).

    Stacks the x/y eigenrows of U_pred_trunc (t_pred*2, k) into a single
    (2*Tp, k) operand with Tp = t_pred rounded up to a multiple of 8
    (sublane alignment); rows [0:Tp) are x, [Tp:2Tp) are y."""
    f32 = jnp.float32
    two_t, _ = U_pred_trunc.shape
    T = two_t // 2
    Tp = ((T + 7) // 8) * 8
    U = U_pred_trunc.astype(f32)
    Ux = jnp.pad(U[0::2, :], ((0, Tp - T), (0, 0)))   # x-component rows
    Uy = jnp.pad(U[1::2, :], ((0, Tp - T), (0, 0)))   # y-component rows
    return jnp.concatenate([Ux, Uy], axis=0)          # (2*Tp, k)


@partial(jax.jit, static_argnums=(2,))
def et_reconstruction(C_pred, U_stack, T, ori, rot_cos, rot_sin, sca):
    """C_pred: (k, N, S);  U_stack: (2*Tp, k) from prepare_u_stack;
    ori: (N, 2);  rot_cos/rot_sin/sca: (N,).  Returns (S, N, T, 2)."""
    f32 = jnp.float32
    k_et, N, S = C_pred.shape
    Tp = U_stack.shape[0] // 2
    SN = S * N
    L = ((SN + 127) // 128) * 128                 # lane-dense output width

    # --- wrapper-side glue (tiny, O(k*S*N), single pad pass each) ----------
    # fold S into the lane axis, sample-major: column index = s*N + n
    C_flat = jnp.transpose(C_pred, (0, 2, 1)).reshape(k_et, SN).astype(f32)
    C_pad = C_flat if L == SN else jnp.pad(C_flat, ((0, 0), (0, L - SN)))

    inv_sca = 1.0 / sca.astype(f32)
    a = rot_cos.astype(f32) * inv_sca
    b = rot_sin.astype(f32) * inv_sca
    params = jnp.stack(
        [a, b, ori[:, 0].astype(f32), ori[:, 1].astype(f32)], axis=0)  # (4, N)
    params = jnp.tile(params, (1, S))                                  # (4, SN)
    params = params if L == SN else jnp.pad(params, ((0, 0), (0, L - SN)))

    # --- gridless single-tile Pallas call (no grid / pipeline machinery) ---
    # Footprint is tiny (~50 KB at test size); lane tiling + "parallel"
    # dimension_semantics only become worthwhile on v7x (2 TCs) at large S*N.
    out = pl.pallas_call(
        _recon_kernel,
        out_shape=jax.ShapeDtypeStruct((2 * Tp, L), f32),
        in_specs=[
            pl.BlockSpec(memory_space=pltpu.MemorySpace.VMEM),   # U_stack
            pl.BlockSpec(memory_space=pltpu.MemorySpace.VMEM),   # C (all S)
            pl.BlockSpec(memory_space=pltpu.MemorySpace.VMEM),   # packed params
        ],
        out_specs=pl.BlockSpec(memory_space=pltpu.MemorySpace.VMEM),
    )(U_stack, C_pad, params)

    # --- unpack to the PyTorch output layout (S, N, T, 2) ------------------
    # Kept only for API parity; downstream consumers that accept the packed
    # (2*Tp, L) slab should skip this.
    xy = out.reshape(2, Tp, L)[:, :T, :SN].reshape(2, T, S, N)
    pred_traj = jnp.transpose(xy, (2, 3, 1, 0))     # (S, N, T, 2)
    return pred_traj


def trajnorm_params(obs_traj):
    """TrajNorm.calculate_params (standard EigenTrajectory implementation):
    origin = last obs point, rotation from heading (last - 3rd-to-last),
    scale = 2 / ||heading||."""
    ori = obs_traj[:, -1, :]                                    # (N, 2)
    d = obs_traj[:, -1, :] - obs_traj[:, -3, :]                 # (N, 2)
    theta = jnp.arctan2(d[:, 1], d[:, 0])
    cos, sin = jnp.cos(theta), jnp.sin(theta)
    sca = 1.0 / jnp.linalg.norm(d, axis=-1) * 2.0               # (N,)
    return ori, cos, sin, sca


def reference_reconstruction(C_pred, U_pred, ori, cos, sin, sca):
    """Plain-JAX transcription of the PyTorch reconstruction() for checking."""
    k_et, N, S = C_pred.shape
    T = U_pred.shape[0] // 2
    rot = jnp.stack([jnp.stack([cos, -sin], axis=1),
                     jnp.stack([sin, cos], axis=1)], axis=1)    # (N, 2, 2)
    rotT = jnp.transpose(rot, (0, 2, 1))
    outs = []
    for s in range(S):
        M = U_pred @ C_pred[:, :, s]                            # (2T, N)
        traj = M.T.reshape(N, T, 2)
        traj = traj / sca[:, None, None]
        traj = jnp.einsum('ntd,nde->nte', traj, rotT)
        traj = traj + ori[:, None, :]
        outs.append(traj)
    return jnp.stack(outs, axis=0)


if __name__ == "__main__":
    # hyper_params: obs_len=8, pred_len=12, traj_dim=2, k=6, num_samples=4
    t_obs, t_pred, dim, k_et, S, N = 8, 12, 2, 6, 4, 8

    key = jax.random.PRNGKey(0)
    k1, k2, k3 = jax.random.split(key, 3)
    # Deterministic synthetic inputs / parameters (module inits U to zeros;
    # random values make the check non-trivial).
    obs_traj = jax.random.normal(k1, (N, t_obs, dim), dtype=jnp.float32)
    C_pred = jax.random.normal(k2, (k_et, N, S), dtype=jnp.float32)
    U_pred_trunc = 0.1 * jax.random.normal(k3, (t_pred * dim, k_et),
                                           dtype=jnp.float32)

    # One-time parameter transform (model-load time).
    U_stack = prepare_u_stack(U_pred_trunc)

    # Normalizer state (set by a prior projection() call in the PyTorch flow).
    # TODO(synk): projection()/truncated_SVD/parameter_initialization (host-side
    # training setup, SVD) are not part of the forward pass and are not kernels.
    ori, cos, sin, sca = trajnorm_params(obs_traj)

    out = et_reconstruction(C_pred, U_stack, t_pred, ori, cos, sin, sca)
    out = jax.block_until_ready(out)

    ref = reference_reconstruction(C_pred, U_pred_trunc, ori, cos, sin, sca)
    assert out.shape == (S, N, t_pred, dim), out.shape
    assert jnp.allclose(out, ref, atol=1e-4, rtol=1e-4), \
        float(jnp.max(jnp.abs(out - ref)))
    print("KERNEL_OK")
</pallas_src>

<mosaic_0001>
module attributes {stable_mosaic.version = 11 : i64} {
  func.func @_recon_kernel(%arg0: memref<32x6xf32, #tpu.memory_space<vmem>>, %arg1: memref<6x128xf32, #tpu.memory_space<vmem>>, %arg2: memref<4x128xf32, #tpu.memory_space<vmem>>, %arg3: memref<32x128xf32, #tpu.memory_space<vmem>>) attributes {dimension_semantics = [], scalar_prefetch = 0 : i64, scratch_operands = 0 : i64, tpu.core_type = #tpu.core_type<tc>} {
    %c0 = arith.constant 0 : index
    %c0_0 = arith.constant 0 : index
    %0 = vector.load %arg0[%c0, %c0_0] : memref<32x6xf32, #tpu.memory_space<vmem>>, vector<32x6xf32>
    %c0_1 = arith.constant 0 : index
    %c0_2 = arith.constant 0 : index
    %1 = vector.load %arg1[%c0_1, %c0_2] : memref<6x128xf32, #tpu.memory_space<vmem>>, vector<6x128xf32>
    %cst = arith.constant dense<0.000000e+00> : vector<32x128xf32>
    %2 = tpu.matmul %0, %1, %cst {dimension_numbers = #tpu.dot_dimension_numbers<[1], [0], [0], [1], [0, 0, 1, 1], [], []>} : vector<32x6xf32>, vector<6x128xf32>, vector<32x128xf32> -> vector<32x128xf32>
    %3 = vector.extract_strided_slice %2 {offsets = [0, 0], sizes = [16, 128], strides = [1, 1]} : vector<32x128xf32> to vector<16x128xf32>
    %4 = vector.extract_strided_slice %2 {offsets = [16, 0], sizes = [16, 128], strides = [1, 1]} : vector<32x128xf32> to vector<16x128xf32>
    %c0_3 = arith.constant 0 : index
    %c0_4 = arith.constant 0 : index
    %5 = vector.load %arg2[%c0_3, %c0_4] : memref<4x128xf32, #tpu.memory_space<vmem>>, vector<1x128xf32>
    %c1 = arith.constant 1 : index
    %c0_5 = arith.constant 0 : index
    %6 = vector.load %arg2[%c1, %c0_5] : memref<4x128xf32, #tpu.memory_space<vmem>>, vector<1x128xf32>
    %c2 = arith.constant 2 : index
    %c0_6 = arith.constant 0 : index
    %7 = vector.load %arg2[%c2, %c0_6] : memref<4x128xf32, #tpu.memory_space<vmem>>, vector<1x128xf32>
    %c3 = arith.constant 3 : index
    %c0_7 = arith.constant 0 : index
    %8 = vector.load %arg2[%c3, %c0_7] : memref<4x128xf32, #tpu.memory_space<vmem>>, vector<1x128xf32>
    %9 = vector.broadcast %5 : vector<1x128xf32> to vector<16x128xf32>
    %10 = arith.mulf %3, %9 : vector<16x128xf32>
    %11 = vector.broadcast %6 : vector<1x128xf32> to vector<16x128xf32>
    %12 = arith.mulf %4, %11 : vector<16x128xf32>
    %13 = arith.subf %10, %12 : vector<16x128xf32>
    %14 = vector.broadcast %7 : vector<1x128xf32> to vector<16x128xf32>
    %15 = arith.addf %13, %14 : vector<16x128xf32>
    %c0_8 = arith.constant 0 : index
    %c0_9 = arith.constant 0 : index
    %16 = vector.load %arg3[%c0_8, %c0_9] : memref<32x128xf32, #tpu.memory_space<vmem>>, vector<16x128xf32>
    tpu.vector_store %arg3[%c0_8, %c0_9], %15 {strides = array<i32>} : memref<32x128xf32, #tpu.memory_space<vmem>>, vector<16x128xf32>,
    %17 = vector.broadcast %6 : vector<1x128xf32> to vector<16x128xf32>
    %18 = arith.mulf %3, %17 : vector<16x128xf32>
    %19 = vector.broadcast %5 : vector<1x128xf32> to vector<16x128xf32>
    %20 = arith.mulf %4, %19 : vector<16x128xf32>
    %21 = arith.addf %18, %20 : vector<16x128xf32>
    %22 = vector.broadcast %8 : vector<1x128xf32> to vector<16x128xf32>
    %23 = arith.addf %21, %22 : vector<16x128xf32>
    %c16 = arith.constant 16 : index
    %c0_10 = arith.constant 0 : index
    %24 = vector.load %arg3[%c16, %c0_10] : memref<32x128xf32, #tpu.memory_space<vmem>>, vector<16x128xf32>
    tpu.vector_store %arg3[%c16, %c0_10], %23 {strides = array<i32>} : memref<32x128xf32, #tpu.memory_space<vmem>>, vector<16x128xf32>,
    return
  }
}

</mosaic_0001>

<bundles_post_ra>
// kernel: tile.9
= control target key start
LH: loop header
LB: loop body
LE: loop exit
PB: predicated region body
PF: predicated region fallthrough
CT: control target
= control target key end

     0   :  { %vm21_vm0 = vcmask 64512   ;;  %s56_s14 = smov 8   ;;  %s57_s15 = smov 16   ;;  %vm27_vm1 = vcmask 261312   ;;  %vm33_vm2 = vcmask 195712   ;;  %vm39_vm3 = vcmask 130112   ;;  %s83_s0 = inlined_call_operand.vmem [shape: f32[4,4,8], index: 0, kind: input, shape index: {}]   ;;  %s84_s1 = inlined_call_operand.vmem [shape: f32[4,32], index: 1, kind: output, shape index: {}]  }
   0x1   :  { %v49_v0 = vld [vmem:[%s83_s0 + $0xc] sm:$0xf]  ;;  %v50_v1 = vld [vmem:[%s83_s0 + $0x8] sm:$0xf]  ;;  %v51_v2 = vld [vmem:[%s83_s0 + $0x4] sm:$0xf] }
   0x2   :  { %8 = vst [vmem:[#allocation1 + $0x18] sm:$0xf] %v49_v0  ;;  %13 = vst [vmem:[#allocation1 + $0x10] sm:$0xf] %v50_v1  ;;  %v18_v3 = vld [vmem:[%s83_s0] sm:$0xf] }
   0x3   :  { %17 = vst [vmem:[#allocation1 + $0x8] sm:$0xf] %v51_v2  ;;  %19 = vst [vmem:[#allocation1] sm:$0xf] %v18_v3  ;;  %s55_s0 = smov 24  }
   0xa   :  { %v24_v4 = vld [vmem:[#allocation1 + $0x3] ss:$8 sm:$0xf]   ;;  %v36_v5 = vld [vmem:[#allocation1 + $0x1] ss:$8 sm:$0xf]  }
   0xb   :  { %25 = vrot.lane.b32.xlu0 %v24_v4, %s55_s0  ;;  %v20_v6 = vld [vmem:[#allocation1] ss:$8 sm:$0xf]   ;;  %v30_v7 = vld [vmem:[#allocation1 + $0x2] ss:$8 sm:$0xf]   ;;  %37 = vrot.lane.b32.xlu1 %v36_v5, %s56_s14 }
   0xc   :  { %22 = vst.msk [vmem:[#allocation0] sm:$0xf] %vm21_vm0, %v20_v6  }
   0xf   :  { %31 = vrot.lane.b32.xlu0 %v30_v7, %s57_s15 }
  0x7d   :  { %v26_v8 = vpop.permute.xlu0 %25   ;;  %v38_v9 = vpop.permute.xlu1 %37  }
  0x7e   :  { %28 = vst.msk [vmem:[#allocation0] sm:$0xf] %vm27_vm1, %v26_v8  }
  0x81   :  { %v32_v10 = vpop.permute.xlu0 %31  }
  0x82   :  { %34 = vst.msk [vmem:[#allocation0] sm:$0xf] %vm33_vm2, %v32_v10  }
  0x83   :  { %40 = vst.msk [vmem:[#allocation0] sm:$0xf] %vm39_vm3, %v38_v9  }
  0x8a   :  { %v44_v11 = vld [vmem:[#allocation0] sm:$0xf] }
  0x8b   :  { %46 = vst [vmem:[%s84_s1] sm:$0xf] %v44_v11 }

// kernel: et_reconstruction.1
= control target key start
LH: loop header
LB: loop body
LE: loop exit
PB: predicated region body
PF: predicated region fallthrough
CT: control target
= control target key end

     0   :  { %vm32_vm0 = vcmask 1045504   ;;  %vm19_vm1 = vcmask 48128   ;;  %s248_s1 = inlined_call_operand.vmem [shape: f32[6,128], index: 1, kind: input, shape index: {}]   ;;  %s249_s0 = inlined_call_operand.vmem [shape: f32[32,6], index: 0, kind: input, shape index: {}]   ;;  %s250_s2 = inlined_call_operand.vmem [shape: f32[4,128], index: 2, kind: input, shape index: {}]   ;;  %s251_s3 = inlined_call_operand.vmem [shape: f32[32,128], index: 3, kind: output, shape index: {}]  }
   0x1   :  { %v18_v0 = vld [vmem:[%s248_s1] sm:$0x3f]  ;;  %v16_v2 = vld [vmem:[%s249_s0 + $0x10] sm:$0xff]  ;;  %v15_v3 = vld [vmem:[%s249_s0 + $0x8] sm:$0xff] }
   0x2   :  { %v14_v1 = vld [vmem:[%s249_s0] sm:$0xff]  ;;  %179 = vmatprep.subr.msk.mxu0 %vm32_vm0, %v18_v0  ;;  %187 = vmatprep.subr.msk.mxu1 %vm32_vm0, %v18_v0  ;;  %v17_v4 = vld [vmem:[%s249_s0 + $0x18] sm:$0xff] }
   0x3   :  { %180 = vmatpush3.msk.msra.mxu0 %vm32_vm0, %v18_v0  ;;  %188 = vmatpush3.msk.msra.mxu1 %vm32_vm0, %v18_v0  ;;  %v170_v5 = vld [vmem:[%s250_s2] ss:$0 sm:$0xff]  ;;  %v171_v6 = vld [vmem:[%s250_s2 + $0x1] ss:$0 sm:$0xff]  ;;  %v172_v17 = vld [vmem:[%s250_s2 + $0x2] ss:$0 sm:$0xff] }
   0x4   :  { %181 = vmatprep.mubr.msk.f32.mxu0 %vm19_vm1, %v14_v1  ;;  %184 = vmatprep.mubr.msk.f32.mxu1 %vm19_vm1, %v16_v2  ;;  %v173_v18 = vld [vmem:[%s250_s2 + $0x3] ss:$0 sm:$0xff] }
   0x5   :  { %182 = vmatmul.mubr.msk.f32.vlgmr.msra.gmra.mrb[0].mxu0 %vm19_vm1, %v15_v3  ;;  %185 = vmatmul.mubr.msk.f32.vlgmr.msra.gmra.mrb[0].mxu1 %vm19_vm1, %v17_v4 }
  0xd8   :  { %v183_v7 = vpop.f32.mrb[0].mxu0  ;;  %v186_v8 = vpop.f32.mrb[0].mxu1 }
  0xd9   :  { %v130_v9 = vmul.f32 %v183_v7, %v170_v5  ;;  %v148_v10 = vmul.f32 %v183_v7, %v171_v6  ;;  %v136_v11 = vmul.f32 %v186_v8, %v171_v6  ;;  %v150_v12 = vmul.f32 %v186_v8, %v170_v5  ;;  %v102_v13 = vpop.f32.mrb[1].mxu0  ;;  %v112_v14 = vpop.f32.mrb[1].mxu1 }
  0xda   :  { %v129_v15 = vmul.f32 %v170_v5, %v102_v13  ;;  %v147_v16 = vmul.f32 %v171_v6, %v102_v13  ;;  %v135_v19 = vmul.f32 %v171_v6, %v112_v14  ;;  %v149_v20 = vmul.f32 %v170_v5, %v112_v14 }
  0xdb   :  { %v138_v21 = vsub.f32 %v130_v9, %v136_v11  ;;  %v152_v22 = vadd.f32 %v150_v12, %v148_v10 }
  0xdc   :  { %v137_v23 = vsub.f32 %v129_v15, %v135_v19  ;;  %v151_v24 = vadd.f32 %v149_v20, %v147_v16 }
  0xdd   :  { %v144_v25 = vadd.f32 %v172_v17, %v138_v21  ;;  %v158_v26 = vadd.f32 %v173_v18, %v152_v22 }
  0xde   :  { %v143_v27 = vadd.f32 %v172_v17, %v137_v23  ;;  %v157_v28 = vadd.f32 %v173_v18, %v151_v24 }
  0xdf   :  { %146 = vst [vmem:[%s251_s3 + $0x8] sm:$0xff] %v144_v25  ;;  %160 = vst [vmem:[%s251_s3 + $0x18] sm:$0xff] %v158_v26 }
  0xe0   :  { %145 = vst [vmem:[%s251_s3] sm:$0xff] %v143_v27  ;;  %159 = vst [vmem:[%s251_s3 + $0x10] sm:$0xff] %v157_v28 }

</bundles_post_ra>
